<compile_context>
chip_gen: v7x
topology: tpu7x:2x2x1
jax: 0.10.0
libtpu: 0.0.40
codegen_flags: <defaults>
</compile_context>

<pallas_src>
import jax
import jax.numpy as jnp
from jax import lax
from jax.experimental import pallas as pl
from jax.experimental.pallas import tpu as pltpu

H1, H2, OUT = 256, 128, 2

# PyTorch-layout contraction (x @ W.T) used only by the bf16 reference below.
_DN = (((1,), (1,)), ((), ()))


def _cdiv(a, b):
    return -(-a // b)


def _round_up(n, m):
    return _cdiv(n, m) * m


def _mlp_kernel(x_ref, w1_ref, b1_ref, w2_ref, b2_ref, w3_ref, b3_ref, o_ref):
    # In-kernel f32 -> bf16 cast: avoids a separate wrapper astype pass over x in HBM.
    x = x_ref[...].astype(w1_ref.dtype)
    # layer 1: canonical (M,K)x(K,N) MXU matmul, f32 accumulate; bias + ReLU in f32
    h1 = jnp.dot(x, w1_ref[...], preferred_element_type=jnp.float32)
    h1 = jnp.maximum(h1 + b1_ref[...], 0.0)
    # layer 2
    h2 = jnp.dot(h1.astype(w2_ref.dtype), w2_ref[...], preferred_element_type=jnp.float32)
    h2 = jnp.maximum(h2 + b2_ref[...], 0.0)
    # layer 3: (tm, 2) logits, no activation
    logits = jnp.dot(h2.astype(w3_ref.dtype), w3_ref[...], preferred_element_type=jnp.float32)
    o_ref[...] = (logits + b3_ref[...]).astype(o_ref.dtype)


def _choose_tm(B, D, tm_req):
    """Pick the batch tile: big enough to amortize per-step overhead, small enough for VMEM,
    and split into >= 2 grid steps when possible (v7x megacore)."""
    # VMEM cap: keep the double-buffered f32 x tile under ~8 MiB.
    vmem_rows = max(8, (8 * 1024 * 1024) // (2 * 4 * max(D, 1)))
    tm = max(8, min(tm_req, vmem_rows))
    # Guarantee at least 2 grid steps when the batch allows (megacore sharding on v7x).
    if B > 8:
        tm = min(tm, _round_up(_cdiv(B, 2), 8))
    if tm >= B:
        return B                      # single block == full array dim (always legal)
    return max(8, (tm // 8) * 8)      # interior tiles must be sublane-(8)-aligned


def binary_decision_forward(x, params, *, tm=1024, compute_dtype=jnp.bfloat16):
    """params: PyTorch-layout W{i}: (out, in), b{i}: (out,). Returns (B, 2) f32 logits."""
    B, D = x.shape
    tm = _choose_tm(B, D, tm)
    grid = (_cdiv(B, tm),)            # ragged last block: OOB reads masked, OOB writes dropped

    # One-time transposes to canonical (K, N) layout; amortized over the whole batch.
    w1 = params["W1"].T.astype(compute_dtype)   # (D, 256)
    w2 = params["W2"].T.astype(compute_dtype)   # (256, 128)
    w3 = params["W3"].T.astype(compute_dtype)   # (128, 2)
    b1 = params["b1"].reshape(1, H1).astype(jnp.float32)
    b2 = params["b2"].reshape(1, H2).astype(jnp.float32)
    b3 = params["b3"].reshape(1, OUT).astype(jnp.float32)

    # Scheduling hint for XLA around the custom call.
    flops = 2 * B * (D * H1 + H1 * H2 + H2 * OUT)
    bytes_accessed = (B * D * x.dtype.itemsize + B * OUT * 4
                      + (D * H1 + H1 * H2 + H2 * OUT) * 2 + (H1 + H2 + OUT) * 4)

    # Explicit VMEM budget (resident weights + double-buffered x/out + live intermediates),
    # never below the 32 MiB scoped default, never above v7x's 64 MiB physical.
    vmem_est = (2 * tm * D * x.dtype.itemsize
                + 2 * tm * OUT * 4
                + 2 * ((D * H1 + H1 * H2 + H2 * OUT) * 2 + (H1 + H2 + OUT) * 4)
                + 3 * tm * (H1 + H2) * 4)
    vmem_limit = int(min(64 * 1024 * 1024, max(32 * 1024 * 1024, 2 * vmem_est)))

    return pl.pallas_call(
        _mlp_kernel,
        out_shape=jax.ShapeDtypeStruct((B, OUT), jnp.float32),
        grid=grid,
        in_specs=[
            pl.BlockSpec((tm, D), lambda i: (i, 0)),      # x tile (pipelined over batch)
            pl.BlockSpec((D, H1), lambda i: (0, 0)),      # W1^T: VMEM-resident across grid
            pl.BlockSpec((1, H1), lambda i: (0, 0)),      # b1
            pl.BlockSpec((H1, H2), lambda i: (0, 0)),     # W2^T
            pl.BlockSpec((1, H2), lambda i: (0, 0)),      # b2
            pl.BlockSpec((H2, OUT), lambda i: (0, 0)),    # W3^T (unpadded, 2 columns)
            pl.BlockSpec((1, OUT), lambda i: (0, 0)),     # b3
        ],
        out_specs=pl.BlockSpec((tm, OUT), lambda i: (i, 0)),
        compiler_params=pltpu.CompilerParams(
            dimension_semantics=("parallel",),
            vmem_limit_bytes=vmem_limit,
        ),
        cost_estimate=pl.CostEstimate(
            flops=flops, transcendentals=0, bytes_accessed=bytes_accessed),
    )(x, w1, b1, w2, b2, w3, b3)


def init_params(key, input_dim):
    """Deterministic synthetic init matching nn.Linear parameter shapes."""
    ks = jax.random.split(key, 6)

    def lin(kw, kb, fan_in, fan_out):
        bound = 1.0 / jnp.sqrt(fan_in)
        W = jax.random.uniform(kw, (fan_out, fan_in), jnp.float32, -bound, bound)
        b = jax.random.uniform(kb, (fan_out,), jnp.float32, -bound, bound)
        return W, b

    W1, b1 = lin(ks[0], ks[1], input_dim, H1)
    W2, b2 = lin(ks[2], ks[3], H1, H2)
    W3, b3 = lin(ks[4], ks[5], H2, OUT)
    return {"W1": W1, "b1": b1, "W2": W2, "b2": b2, "W3": W3, "b3": b3}


def _reference(x, p, compute_dtype=jnp.bfloat16):
    """Same math as the kernel: bf16 operands into the matmul, f32 accumulation."""
    xc = x.astype(compute_dtype)
    h1 = lax.dot_general(xc, p["W1"].astype(compute_dtype), _DN,
                         preferred_element_type=jnp.float32)
    h1 = jnp.maximum(h1 + p["b1"], 0.0)
    h2 = lax.dot_general(h1.astype(compute_dtype), p["W2"].astype(compute_dtype), _DN,
                         preferred_element_type=jnp.float32)
    h2 = jnp.maximum(h2 + p["b2"], 0.0)
    out = lax.dot_general(h2.astype(compute_dtype), p["W3"].astype(compute_dtype), _DN,
                          preferred_element_type=jnp.float32)
    return out + p["b3"]


def _reference_f32(x, p):
    h1 = jnp.maximum(x @ p["W1"].T + p["b1"], 0.0)
    h2 = jnp.maximum(h1 @ p["W2"].T + p["b2"], 0.0)
    return h2 @ p["W3"].T + p["b3"]


if __name__ == "__main__":
    key = jax.random.PRNGKey(0)
    k_x, k_p, k_x2 = jax.random.split(key, 3)

    batch, input_dim = 8, 32
    x = jax.random.normal(k_x, (batch, input_dim), jnp.float32)
    params = init_params(k_p, input_dim)

    out = jax.block_until_ready(binary_decision_forward(x, params))
    assert out.shape == (batch, OUT)
    assert jnp.allclose(out, _reference(x, params), atol=2e-3, rtol=2e-3)
    assert jnp.allclose(out, _reference_f32(x, params), atol=5e-2, rtol=5e-2)

    # Ragged multi-tile grid path: B=40 with tm=16 -> grid=3, last block half-masked.
    x2 = jax.random.normal(k_x2, (40, input_dim), jnp.float32)
    out2 = jax.block_until_ready(binary_decision_forward(x2, params, tm=16))
    assert out2.shape == (40, OUT)
    assert jnp.allclose(out2, _reference(x2, params), atol=2e-3, rtol=2e-3)

    # Default tile selection with a ragged batch (exercises the >=2-step megacore split).
    out3 = jax.block_until_ready(binary_decision_forward(x2, params))
    assert out3.shape == (40, OUT)
    assert jnp.allclose(out3, _reference(x2, params), atol=2e-3, rtol=2e-3)

    print("KERNEL_OK")
</pallas_src>

<mosaic_0001>
module attributes {stable_mosaic.version = 11 : i64} {
  func.func @_mlp_kernel(%arg0: i32, %arg1: memref<8x32xf32, #tpu.memory_space<vmem>>, %arg2: memref<32x256xbf16, #tpu.memory_space<vmem>>, %arg3: memref<1x256xf32, #tpu.memory_space<vmem>>, %arg4: memref<256x128xbf16, #tpu.memory_space<vmem>>, %arg5: memref<1x128xf32, #tpu.memory_space<vmem>>, %arg6: memref<128x2xbf16, #tpu.memory_space<vmem>>, %arg7: memref<1x2xf32, #tpu.memory_space<vmem>>, %arg8: memref<8x2xf32, #tpu.memory_space<vmem>>) attributes {dimension_semantics = [#tpu.dimension_semantics<parallel>], iteration_bounds = array<i64: 1>, scalar_prefetch = 0 : i64, scratch_operands = 0 : i64, tpu.core_type = #tpu.core_type<tc>, window_params = [{transform_indices = @transform_0, window_bounds = array<i64: 8, 32>}, {pipeline_mode = #tpu.pipeline_mode<synchronous>, transform_indices = @transform_1, window_bounds = array<i64: 32, 256>}, {pipeline_mode = #tpu.pipeline_mode<synchronous>, transform_indices = @transform_2, window_bounds = array<i64: 1, 256>}, {pipeline_mode = #tpu.pipeline_mode<synchronous>, transform_indices = @transform_3, window_bounds = array<i64: 256, 128>}, {pipeline_mode = #tpu.pipeline_mode<synchronous>, transform_indices = @transform_4, window_bounds = array<i64: 1, 128>}, {pipeline_mode = #tpu.pipeline_mode<synchronous>, transform_indices = @transform_5, window_bounds = array<i64: 128, 2>}, {pipeline_mode = #tpu.pipeline_mode<synchronous>, transform_indices = @transform_6, window_bounds = array<i64: 1, 2>}, {transform_indices = @transform_7, window_bounds = array<i64: 8, 2>}]} {
    %c0 = arith.constant 0 : index
    %c0_0 = arith.constant 0 : index
    %0 = vector.load %arg1[%c0, %c0_0] : memref<8x32xf32, #tpu.memory_space<vmem>>, vector<8x32xf32>
    %1 = arith.truncf %0 : vector<8x32xf32> to vector<8x32xbf16>
    %c0_1 = arith.constant 0 : index
    %c0_2 = arith.constant 0 : index
    %2 = vector.load %arg2[%c0_1, %c0_2] : memref<32x256xbf16, #tpu.memory_space<vmem>>, vector<32x256xbf16>
    %cst = arith.constant dense<0.000000e+00> : vector<8x256xf32>
    %3 = tpu.matmul %1, %2, %cst {dimension_numbers = #tpu.dot_dimension_numbers<[1], [0], [0], [1], [0, 0, 1, 1], [], []>} : vector<8x32xbf16>, vector<32x256xbf16>, vector<8x256xf32> -> vector<8x256xf32>
    %c0_3 = arith.constant 0 : index
    %c0_4 = arith.constant 0 : index
    %4 = vector.load %arg3[%c0_3, %c0_4] : memref<1x256xf32, #tpu.memory_space<vmem>>, vector<1x256xf32>
    %5 = vector.broadcast %4 : vector<1x256xf32> to vector<8x256xf32>
    %6 = arith.addf %3, %5 : vector<8x256xf32>
    %cst_5 = arith.constant 0.000000e+00 : f32
    %7 = vector.broadcast %cst_5 : f32 to vector<8x256xf32>
    %8 = arith.maximumf %6, %7 : vector<8x256xf32>
    %9 = arith.truncf %8 : vector<8x256xf32> to vector<8x256xbf16>
    %c0_6 = arith.constant 0 : index
    %c0_7 = arith.constant 0 : index
    %10 = vector.load %arg4[%c0_6, %c0_7] : memref<256x128xbf16, #tpu.memory_space<vmem>>, vector<256x128xbf16>
    %cst_8 = arith.constant dense<0.000000e+00> : vector<8x128xf32>
    %11 = tpu.matmul %9, %10, %cst_8 {dimension_numbers = #tpu.dot_dimension_numbers<[1], [0], [0], [1], [0, 0, 1, 1], [], []>} : vector<8x256xbf16>, vector<256x128xbf16>, vector<8x128xf32> -> vector<8x128xf32>
    %c0_9 = arith.constant 0 : index
    %c0_10 = arith.constant 0 : index
    %12 = vector.load %arg5[%c0_9, %c0_10] : memref<1x128xf32, #tpu.memory_space<vmem>>, vector<1x128xf32>
    %13 = vector.broadcast %12 : vector<1x128xf32> to vector<8x128xf32>
    %14 = arith.addf %11, %13 : vector<8x128xf32>
    %cst_11 = arith.constant 0.000000e+00 : f32
    %15 = vector.broadcast %cst_11 : f32 to vector<8x128xf32>
    %16 = arith.maximumf %14, %15 : vector<8x128xf32>
    %17 = arith.truncf %16 : vector<8x128xf32> to vector<8x128xbf16>
    %c0_12 = arith.constant 0 : index
    %c0_13 = arith.constant 0 : index
    %18 = vector.load %arg6[%c0_12, %c0_13] : memref<128x2xbf16, #tpu.memory_space<vmem>>, vector<128x2xbf16>
    %cst_14 = arith.constant dense<0.000000e+00> : vector<8x2xf32>
    %19 = tpu.matmul %17, %18, %cst_14 {dimension_numbers = #tpu.dot_dimension_numbers<[1], [0], [0], [1], [0, 0, 1, 1], [], []>} : vector<8x128xbf16>, vector<128x2xbf16>, vector<8x2xf32> -> vector<8x2xf32>
    %c0_15 = arith.constant 0 : index
    %c0_16 = arith.constant 0 : index
    %20 = vector.load %arg7[%c0_15, %c0_16] : memref<1x2xf32, #tpu.memory_space<vmem>>, vector<1x2xf32>
    %21 = vector.broadcast %20 : vector<1x2xf32> to vector<8x2xf32>
    %22 = arith.addf %19, %21 : vector<8x2xf32>
    %c0_17 = arith.constant 0 : index
    %c0_18 = arith.constant 0 : index
    %23 = vector.load %arg8[%c0_17, %c0_18] : memref<8x2xf32, #tpu.memory_space<vmem>>, vector<8x2xf32>
    tpu.vector_store %arg8[%c0_17, %c0_18], %22 {strides = array<i32>} : memref<8x2xf32, #tpu.memory_space<vmem>>, vector<8x2xf32>,
    return
  }
  func.func @transform_0(%arg0: i32) -> (i32, i32) {
    %c0_i32 = arith.constant 0 : i32
    %c0_i32_0 = arith.constant 0 : i32
    return %arg0, %c0_i32 : i32, i32
  }
  func.func @transform_1(%arg0: i32) -> (i32, i32) {
    %c0_i32 = arith.constant 0 : i32
    %c0_i32_0 = arith.constant 0 : i32
    %c0_i32_1 = arith.constant 0 : i32
    return %c0_i32, %c0_i32_0 : i32, i32
  }
  func.func @transform_2(%arg0: i32) -> (i32, i32) {
    %c0_i32 = arith.constant 0 : i32
    %c0_i32_0 = arith.constant 0 : i32
    %c0_i32_1 = arith.constant 0 : i32
    return %c0_i32, %c0_i32_0 : i32, i32
  }
  func.func @transform_3(%arg0: i32) -> (i32, i32) {
    %c0_i32 = arith.constant 0 : i32
    %c0_i32_0 = arith.constant 0 : i32
    %c0_i32_1 = arith.constant 0 : i32
    return %c0_i32, %c0_i32_0 : i32, i32
  }
  func.func @transform_4(%arg0: i32) -> (i32, i32) {
    %c0_i32 = arith.constant 0 : i32
    %c0_i32_0 = arith.constant 0 : i32
    %c0_i32_1 = arith.constant 0 : i32
    return %c0_i32, %c0_i32_0 : i32, i32
  }
  func.func @transform_5(%arg0: i32) -> (i32, i32) {
    %c0_i32 = arith.constant 0 : i32
    %c0_i32_0 = arith.constant 0 : i32
    %c0_i32_1 = arith.constant 0 : i32
    return %c0_i32, %c0_i32_0 : i32, i32
  }
  func.func @transform_6(%arg0: i32) -> (i32, i32) {
    %c0_i32 = arith.constant 0 : i32
    %c0_i32_0 = arith.constant 0 : i32
    %c0_i32_1 = arith.constant 0 : i32
    return %c0_i32, %c0_i32_0 : i32, i32
  }
  func.func @transform_7(%arg0: i32) -> (i32, i32) {
    %c0_i32 = arith.constant 0 : i32
    %c0_i32_0 = arith.constant 0 : i32
    return %arg0, %c0_i32 : i32, i32
  }
}

</mosaic_0001>

<bundles_post_ra>
// kernel: tpu_custom_call.1
= control target key start
LH: loop header
LB: loop body
LE: loop exit
PB: predicated region body
PF: predicated region fallthrough
CT: control target
= control target key end

     0   :  { %12 = vsyncpa [#allocation3], 0  ;;  %s565_s24 = smov [#allocation2]   ;;  %s674_s0 = inlined_call_operand.vmem [shape: f32[8,32], index: 0, kind: input, shape index: {}]   ;;  %s675_s1 = inlined_call_operand.vmem [shape: bf16[32,256], index: 1, kind: input, shape index: {}]   ;;  %s676_s2 = inlined_call_operand.vmem [shape: f32[1,256], index: 2, kind: input, shape index: {}]   ;;  %s677_s3 = inlined_call_operand.hbm [shape: bf16[256,128], index: 3, kind: input, shape index: {}]   ;;  %s678_s4 = inlined_call_operand.vmem [shape: f32[1,128], index: 4, kind: input, shape index: {}]   ;;  %s679_s5 = inlined_call_operand.vmem [shape: bf16[128,2], index: 5, kind: input, shape index: {}]   ;;  %s680_s6 = inlined_call_operand.vmem [shape: f32[1,2], index: 6, kind: input, shape index: {}]   ;;  %s681_s7 = inlined_call_operand.vmem [shape: f32[8,2], index: 7, kind: output, shape index: {}]  }
   0x1   :  { %s24_s25 = sshll.u32 %s565_s24, 4  ;;  %s541_s28 = scalar_lea.hbm %s677_s3, 2048  ;;  %s25_s25 = int_to_ptr.vmem [resolvable:$true] %s24_s25 }
   0x2   :  { %p542_p0 = scmp.ne.s32.totalorder %s677_s3, %s541_s28  ;;  %p545_p1 = scmp.lt.u32.totalorder %s541_s28, %s677_s3 }
   0x4   :  { %p547_p2 = pnand %p545_p1, %p542_p0 }
   0x6   :  { %550 = shalt.err (!%p547_p2)
}
   0x7   :  { %s551_s10 = scalar_lea.vmem %s25_s25, 2048  ;;  %p556_p4 = scmp.lt.s32.totalorder %s25_s25, %s25_s25 }
   0x8   :  { %p552_p3 = scmp.ne.s32.totalorder %s25_s25, %s551_s10  ;;  %p557_p5 = scmp.lt.s32.totalorder %s551_s10, %s551_s10 }
   0xa   :  { %p558_p6 = por %p557_p5, %p556_p4 }
   0xc   :  { %p559_p7 = pnand %p558_p6, %p552_p3 }
   0xe   :  { %562 = shalt.err (!%p559_p7)
}
   0xf   :  { %s566_s11 = smov 64   ;;  %s567_s12 = smov 4  }
  0x10   :  { %30 = dma.hbm_to_vmem [thread:$0]  %s677_s3, 2048, %s25_s25, [#allocation3], %s566_s11, %s566_s11, %s567_s12  }
  0x11   :  { %563 = dma.done.wait [#allocation3], 2048  }
  0x12   :  { %564 = vsyncadd [#allocation3], 4294965248  ;;  %v568_v0 = vmov 0   ;;  %v511_v1 = vld [vmem:[%s675_s1 + $0x4] ss:$8 sps:$4 sm:$0xff]   ;;  %vm79_vm0 = vcmask 261120   ;;  %v49_v30 = vlaneseq }
  0x13   :  { %115 = vmatprep.mubr.bf16.mxu0 %v568_v0  ;;  %v513_v2 = vld [vmem:[%s675_s1] ss:$8 sps:$4 sm:$0xff]   ;;  %83 = vmatprep.subr.bf16.mxu0 %v511_v1  ;;  %v514_v3 = vld [vmem:[%s675_s1 + $0x14] ss:$8 sps:$4 sm:$0xff]   ;;  %v516_v4 = vld [vmem:[%s675_s1 + $0x10] ss:$8 sps:$4 sm:$0xff]  }
  0x14   :  { %v41_v5 = vld [vmem:[%s674_s0] sm:$0xff]  ;;  %84 = vmatpush1.bf16.msra.mxu0 %v513_v2  ;;  %v519_v8 = vld [vmem:[#allocation2 + $0x48] sm:$0xff]   ;;  %v521_v11 = vld [vmem:[#allocation2 + $0x50] sm:$0xff]   ;;  %v569_v24 = vmov 0.0   ;;  %v50_v31 = vshrl.u32 %v49_v30, 7  ;;  %vm570_vm1 = vmmov 0  }
  0x15   :  { %v517_v6 = vld [vmem:[#allocation2 + $0x40] sm:$0xff]   ;;  %85 = vmatprep.subr.bf16.mxu0 %v514_v3  ;;  %v42_v9 = vpack.c.bf16 %v41_v5, %v41_v5  ;;  %v520_v10 = vld [vmem:[#allocation2 + $0x8] sm:$0xff]   ;;  %v522_v12 = vld [vmem:[#allocation2 + $0x10] sm:$0xff]   ;;  %vm416_vm2 = vcmask 15360  }
  0x16   :  { %v518_v7 = vld [vmem:[#allocation2] sm:$0xff]   ;;  %454 = vmatprep.subr.bf16.mxu1 %v517_v6  ;;  %v523_v13 = vld [vmem:[#allocation2 + $0x58] sm:$0xff]   ;;  %v527_v17 = vld [vmem:[#allocation2 + $0x68] sm:$0xff]   ;;  %v51_v32 = vsub.s32 0, %v50_v31  ;;  %v55_v34 = vsub.s32 1, %v50_v31 }
  0x17   :  { %455 = vmatpush3.bf16.msra.mxu1 %v518_v7  ;;  %v524_v14 = vld [vmem:[#allocation2 + $0x18] sm:$0xff]   ;;  %v525_v15 = vld [vmem:[#allocation2 + $0x60] sm:$0xff]   ;;  %v528_v18 = vld [vmem:[#allocation2 + $0x28] sm:$0xff]  }
  0x18   :  { %86 = vmatpush1.bf16.msra.mxu0 %v516_v4  ;;  %456 = vmatprep.subr.bf16.mxu1 %v519_v8  ;;  %v526_v16 = vld [vmem:[#allocation2 + $0x20] sm:$0xff]   ;;  %v529_v19 = vld [vmem:[#allocation2 + $0x70] sm:$0xff]   ;;  %v531_v21 = vld [vmem:[#allocation2 + $0x78] sm:$0xff]  }
  0x19   :  { %v530_v20 = vld [vmem:[#allocation2 + $0x30] sm:$0xff]   ;;  %v532_v22 = vld [vmem:[#allocation2 + $0x38] sm:$0xff]   ;;  %v533_v23 = vld [vmem:[%s679_s5] sm:$0xff]   ;;  %485 = vmatprep.subr.bf16.mxu0 %v569_v24 }
  0x1a   :  { %v534_v25 = vld [vmem:[%s679_s5 + $0x8] sm:$0xff]   ;;  %v535_v26 = vld [vmem:[%s679_s5 + $0x10] sm:$0xff]   ;;  %v536_v27 = vld [vmem:[%s679_s5 + $0x18] sm:$0xff]  }
  0x1b   :  { %427 = vmatmul.mubr.msk.bf16.vlgmr.msra.gmra.mrb[0].mxu0 %vm79_vm0, %v42_v9  ;;  %457 = vmatpush3.bf16.msra.mxu1 %v520_v10  ;;  %v537_v28 = vld [vmem:[%s679_s5 + $0x20] sm:$0xff]   ;;  %v538_v29 = vld [vmem:[%s679_s5 + $0x28] sm:$0xff]   ;;  %v539_v47 = vld [vmem:[%s679_s5 + $0x30] sm:$0xff]  }
  0x1c   :  { %458 = vmatprep.subr.bf16.mxu1 %v521_v11  ;;  %486 = vmatpush3.bf16.msra.mxu0 %v533_v23  ;;  %v47_v33 = vld [vmem:[%s676_s2] sm:$0x3]  ;;  %v540_v48 = vld [vmem:[%s679_s5 + $0x38] sm:$0xff]  }
  0x1d   :  { %487 = vmatprep.subr.bf16.mxu0 %v569_v24  ;;  %v52_v35 = vrot.slane %v47_v33, %v51_v32  ;;  %v56_v36 = vrot.slane %v47_v33, %v55_v34  ;;  %501 = vmatprep.mubr.msk.bf16.mxu0 %vm570_vm1, %v569_v24  ;;  %v428_v50 = vld [vmem:[%s678_s4] ss:$0 sm:$0xff] }
  0x1e   :  { %v445_v58 = vld [vmem:[%s680_s6] ss:$0 sm:$0xff] }
  0x1f   :  { %459 = vmatpush3.bf16.msra.mxu1 %v522_v12 }
  0x20   :  { %460 = vmatprep.subr.bf16.mxu1 %v523_v13  ;;  %488 = vmatpush3.bf16.msra.mxu0 %v534_v25 }
  0x21   :  { %489 = vmatprep.subr.bf16.mxu0 %v569_v24 }
  0x23   :  { %461 = vmatpush3.bf16.msra.mxu1 %v524_v14 }
  0x24   :  { %462 = vmatprep.subr.bf16.mxu1 %v525_v15  ;;  %490 = vmatpush3.bf16.msra.mxu0 %v535_v26 }
  0x25   :  { %491 = vmatprep.subr.bf16.mxu0 %v569_v24 }
  0x27   :  { %463 = vmatpush3.bf16.msra.mxu1 %v526_v16 }
  0x28   :  { %464 = vmatprep.subr.bf16.mxu1 %v527_v17  ;;  %492 = vmatpush3.bf16.msra.mxu0 %v536_v27 }
  0x29   :  { %493 = vmatprep.subr.bf16.mxu0 %v569_v24 }
  0x2b   :  { %465 = vmatpush3.bf16.msra.mxu1 %v528_v18 }
  0x2c   :  { %466 = vmatprep.subr.bf16.mxu1 %v529_v19  ;;  %494 = vmatpush3.bf16.msra.mxu0 %v537_v28 }
  0x2d   :  { %495 = vmatprep.subr.bf16.mxu0 %v569_v24 }
  0x2f   :  { %467 = vmatpush3.bf16.msra.mxu1 %v530_v20 }
  0x30   :  { %468 = vmatprep.subr.bf16.mxu1 %v531_v21  ;;  %496 = vmatpush3.bf16.msra.mxu0 %v538_v29 }
  0x31   :  { %497 = vmatprep.subr.bf16.mxu0 %v569_v24 }
  0x33   :  { %469 = vmatpush3.bf16.msra.mxu1 %v532_v22 }
  0x34   :  { %498 = vmatpush3.bf16.msra.mxu0 %v539_v47 }
  0x35   :  { %499 = vmatprep.subr.bf16.mxu0 %v569_v24 }
  0x38   :  { %500 = vmatpush3.bf16.msra.mxu0 %v540_v48 }
  0xee   :  { %v117_v37 = vpop.f32.mrb[0].mxu0 }
  0xef   :  { %v118_v38 = vadd.f32 %v117_v37, %v52_v35  ;;  %v119_v39 = vpop.f32.mrb[1].mxu0 }
  0xf0   :  { %v120_v40 = vadd.f32 %v119_v39, %v56_v36  ;;  %v121_v41 = vpop.f32.mrb[2].mxu0 }
  0xf1   :  { %v124_v42 = vmax.f32 %v118_v38, 0.0  ;;  %v122_v43 = vpop.f32.mrb[3].mxu0 }
  0xf2   :  { %v125_v44 = vmax.f32 %v120_v40, 0.0 }
  0xf3   :  { %v126_v46 = vpack.c.bf16 %v124_v42, %v124_v42 }
  0xf4   :  { %v127_v45 = vpack.c.bf16 %v125_v44, %v125_v44 }
  0xf6   :  { %295 = vmatprep.mubr.bf16.mxu1 %v127_v45 }
  0xf7   :  { %296 = vmatmul.mubr.bf16.vlgmr.msra.gmra.mrb[0].mxu1 %v126_v46 }
 0x1ca   :  { %v470_v49 = vpop.f32.mrb[0].mxu1 }
 0x1cb   :  { %v471_v51 = vpop.f32.mrb[1].mxu1 }
 0x1cc   :  { %v472_v52 = vadd.f32 %v471_v51, %v470_v49  ;;  %v473_v53 = vpop.f32.mrb[2].mxu1 }
 0x1cd   :  { %v474_v54 = vpop.f32.mrb[3].mxu1 }
 0x1ce   :  { %v298_v55 = vadd.f32 %v472_v52, %v428_v50 }
 0x1d0   :  { %v303_v56 = vmax.f32 %v298_v55, 0.0 }
 0x1d2   :  { %v304_v57 = vpack.c.bf16 %v303_v56, %v303_v56 }
 0x1d4   :  { %502 = vmatmul.mubr.bf16.vlgmr.msra.gmra.mrb[4].mxu0 %v304_v57 }
 0x2a7   :  { %v410_v59 = vpop.f32.mrb[4].mxu0 }
 0x2a8   :  { %v411_v60 = vadd.f32 %v445_v58, %v410_v59  ;;  %v503_v61 = vpop.f32.mrb[5].mxu0 }
 0x2a9   :  { %v413_v62 = vpop.f32.mrb[6].mxu0 }
 0x2aa   :  { %417 = vst.msk [vmem:[%s681_s7] sm:$0xff] %vm416_vm2, %v411_v60  ;;  %v504_v63 = vpop.f32.mrb[7].mxu0 }
 0x2ab   :  { %422 = vsyncpa [#allocation3], 1 }

</bundles_post_ra>
